<compile_context>
chip_gen: v5e
topology: v5e:2x2
jax: 0.10.0
libtpu: 0.0.40
codegen_flags: <defaults>
</compile_context>

<pallas_src>
import functools

import jax
import jax.numpy as jnp
import numpy as np
from jax.experimental import pallas as pl
from jax.experimental.pallas import tpu as pltpu

_LANE = 128
_SUBLANE = 8
_TARGET_TILE_BYTES = 8 * 1024 * 1024   # total VMEM budget for all double-buffered blocks
_MAX_TILE_ROWS = 1024                  # 512-1024 rows already hit ~85% of HBM roofline
_MIN_TILE_ROWS = 512                   # don't shrink below this for megacore balancing


def _round_up(x, m):
    return ((x + m - 1) // m) * m


def _lanes(n):
    return _round_up(max(int(n), 1), _LANE)


def _ordinal_kernel(x_ref, mask_ref, logp_ref, ordprob_ref, label_ref, *, ord_num):
    """One (tn, 2*ord_num) full-row tile of the ordinal regression head."""
    x = x_ref[...]                                  # (tn, 2*ord_num) f32, contiguous rows
    a = x[:, :ord_num]                              # channel 0 of view(-1, 2, ord_num)
    b = x[:, ord_num:]                              # channel 1
    d = a - b

    # 2-class softmax, closed form (stable):
    #   log_p0 = -softplus(-d) = min(d, 0) - log1p(exp(-|d|))
    #   log_p1 = log_p0 - d
    #   p0     = sigmoid(d)
    z = jnp.exp(-jnp.abs(d))                        # exp(-|d|) in (0, 1]
    log_p0 = jnp.minimum(d, 0.0) - jnp.log1p(z)
    log_p1 = log_p0 - d

    # Fused, contiguous log-prob output: [:, :ord_num]=ch0, [:, ord_num:]=ch1.
    # Single aligned full-block store; the concat's lane shuffle is free filler.
    logp_ref[...] = jnp.concatenate([log_p0, log_p1], axis=-1)

    r = pl.reciprocal(1.0 + z, approx=False)        # exact; divide sits on the EUP
    p0 = jnp.where(d >= 0.0, r, z * r)              # sigmoid(d), stable both tails
    ordprob_ref[...] = p0

    # sigmoid(d) > 0.5  <=>  d > 0; decoupled from the reciprocal chain.
    contrib = jnp.where(d > 0.0, mask_ref[...], 0.0)          # (tn, ord_num)
    label_ref[...] = jnp.sum(contrib, axis=1, keepdims=True)   # (tn, 1)


def _choose_tile_rows(n_rows, channels, ord_num):
    """Row-tile size from a VMEM budget, capped for bandwidth + megacore balance."""
    # f32 bytes per row in VMEM, counting lane padding of every block and
    # double buffering (x, logp, ord_prob, label); the resident mask is negligible.
    per_row = 4 * 2 * (2 * _lanes(channels) + _lanes(ord_num) + _LANE)
    tn = _TARGET_TILE_BYTES // per_row
    tn = min(tn, _MAX_TILE_ROWS)
    # v7x megacore balance: aim for >= 8 grid steps when N is large enough,
    # but never drop below the bandwidth-efficient tile floor.
    tn = min(tn, max(_MIN_TILE_ROWS, -(-n_rows // 8)))
    tn = max(_SUBLANE, (tn // _SUBLANE) * _SUBLANE)
    tn = min(tn, _round_up(n_rows, _SUBLANE))
    return tn


def ordinal_regression_layer(x, mask, *, tile_n=None):
    """Returns (prob (N,2,ord_num), ord_prob (N,ord_num), ord_label (N,)).

    Matches PyTorch OrdinalRegressionLayer.forward semantics (x is (N, C)).
    """
    N, C = x.shape
    assert C % 2 == 0, "C must be even (view(-1, 2, ord_num))"
    ord_num = C // 2
    mask2d = jnp.asarray(mask, jnp.float32).reshape(1, -1)
    assert mask2d.shape[1] == ord_num, (
        "mask width must equal ord_num == C//2 (as in the PyTorch broadcast)")

    x = x.astype(jnp.float32)

    if tile_n is None:
        tn = _choose_tile_rows(N, C, ord_num)
    else:
        tn = max(_SUBLANE, _round_up(int(tile_n), _SUBLANE))

    grid = (pl.cdiv(N, tn),)   # ragged last block allowed: OOB reads are row-local,
                               # OOB writes are dropped by the pipeline.

    kernel = functools.partial(_ordinal_kernel, ord_num=ord_num)

    cost = pl.CostEstimate(
        flops=10 * N * ord_num,
        transcendentals=2 * N * ord_num,
        bytes_accessed=4 * (N * C            # x read
                            + ord_num        # mask read
                            + N * C          # log-prob write
                            + N * ord_num    # ord_prob write
                            + N),            # label write
    )

    logp, ord_prob, label = pl.pallas_call(
        kernel,
        out_shape=(
            jax.ShapeDtypeStruct((N, C), jnp.float32),        # fused log-probs
            jax.ShapeDtypeStruct((N, ord_num), jnp.float32),  # ord_prob
            jax.ShapeDtypeStruct((N, 1), jnp.float32),        # ord_label (pre-squeeze)
        ),
        grid_spec=pltpu.PrefetchScalarGridSpec(
            num_scalar_prefetch=0,
            grid=grid,
            in_specs=[
                pl.BlockSpec((tn, C), lambda i: (i, 0)),          # full contiguous rows
                pl.BlockSpec((1, ord_num), lambda i: (0, 0)),     # mask stays resident
            ],
            out_specs=(
                pl.BlockSpec((tn, C), lambda i: (i, 0)),
                pl.BlockSpec((tn, ord_num), lambda i: (i, 0)),
                pl.BlockSpec((tn, 1), lambda i: (i, 0)),
            ),
        ),
        compiler_params=pltpu.CompilerParams(
            dimension_semantics=("parallel",),   # shards row tiles across TCs on v7x
            vmem_limit_bytes=32 << 20,           # >> tile footprint, < v7x 64 MiB physical
        ),
        cost_estimate=cost,
    )(x, mask2d)

    # Free row-major reshape: [:, 0, :] = log_p0, [:, 1, :] = log_p1.
    prob = logp.reshape(N, 2, ord_num)
    return prob, ord_prob, label[:, 0]


def make_mask(num_class):
    # Deterministic reproduction of the module's __init__ buffer:
    # F.pad(F.pad(zeros(1,1), (num_class,0), value=-1), (0,num_class), value=+1)
    # => [ -1 ... -1 (num_class), 0, +1 ... +1 (num_class) ], shape (1, 2*num_class+1)
    return jnp.concatenate([
        -jnp.ones((num_class,), jnp.float32),
        jnp.zeros((1,), jnp.float32),
        jnp.ones((num_class,), jnp.float32),
    ]).reshape(1, 2 * num_class + 1)


def _reference(x, mask):
    N, C = x.shape
    ord_num = C // 2
    xr = x.reshape(-1, 2, ord_num)
    prob_ref = jax.nn.log_softmax(xr, axis=1)
    ord_prob_ref = jax.nn.softmax(xr, axis=1)[:, 0, :]
    ord_label_ref = jnp.sum((ord_prob_ref > 0.5) * mask, axis=1)
    return prob_ref, ord_prob_ref, ord_label_ref


if __name__ == "__main__":
    run = jax.jit(ordinal_regression_layer, static_argnames=("tile_n",))

    # --- test 1: module-faithful shapes (the PyTorch broadcast
    # (ord_prob > 0.5) * mask requires ord_num == 2*num_class + 1). -----------
    num_class = 7
    ord_num = 2 * num_class + 1          # 15
    N, C = 64, 2 * ord_num               # (64, 30)
    key = jax.random.PRNGKey(0)
    x = jax.random.normal(key, (N, C), dtype=jnp.float32)
    mask = make_mask(num_class)

    prob, ord_prob, ord_label = jax.block_until_ready(run(x, mask))
    prob_ref, ord_prob_ref, ord_label_ref = _reference(x, mask)

    assert prob.shape == (N, 2, ord_num)
    assert ord_prob.shape == (N, ord_num)
    assert ord_label.shape == (N,)
    assert np.allclose(np.asarray(prob), np.asarray(prob_ref), atol=1e-5)
    assert np.allclose(np.asarray(ord_prob), np.asarray(ord_prob_ref), atol=1e-5)
    assert np.allclose(np.asarray(ord_label), np.asarray(ord_label_ref), atol=1e-5)

    # --- test 2: multi-tile grid with a ragged (partially OOB) last tile -----
    num_class2 = 3
    ord_num2 = 2 * num_class2 + 1        # 7
    N2, C2 = 37, 2 * ord_num2            # N2 not a multiple of the tile -> ragged tail
    x2 = jax.random.normal(jax.random.PRNGKey(1), (N2, C2), dtype=jnp.float32)
    mask2 = make_mask(num_class2)

    prob2, ord_prob2, ord_label2 = jax.block_until_ready(run(x2, mask2, tile_n=8))
    prob2_ref, ord_prob2_ref, ord_label2_ref = _reference(x2, mask2)

    assert np.allclose(np.asarray(prob2), np.asarray(prob2_ref), atol=1e-5)
    assert np.allclose(np.asarray(ord_prob2), np.asarray(ord_prob2_ref), atol=1e-5)
    assert np.allclose(np.asarray(ord_label2), np.asarray(ord_label2_ref), atol=1e-5)

    print("KERNEL_OK")
</pallas_src>

<mosaic_0001>
module attributes {stable_mosaic.version = 11 : i64} {
  func.func @_ordinal_kernel(%arg0: i32, %arg1: memref<64x30xf32, #tpu.memory_space<vmem>>, %arg2: memref<1x15xf32, #tpu.memory_space<vmem>>, %arg3: memref<64x30xf32, #tpu.memory_space<vmem>>, %arg4: memref<64x15xf32, #tpu.memory_space<vmem>>, %arg5: memref<64x1xf32, #tpu.memory_space<vmem>>) attributes {dimension_semantics = [#tpu.dimension_semantics<parallel>], iteration_bounds = array<i64: 1>, scalar_prefetch = 0 : i64, scratch_operands = 0 : i64, tpu.core_type = #tpu.core_type<tc>, window_params = [{transform_indices = @transform_0, window_bounds = array<i64: 64, 30>}, {pipeline_mode = #tpu.pipeline_mode<synchronous>, transform_indices = @transform_1, window_bounds = array<i64: 1, 15>}, {transform_indices = @transform_2, window_bounds = array<i64: 64, 30>}, {transform_indices = @transform_3, window_bounds = array<i64: 64, 15>}, {transform_indices = @transform_4, window_bounds = array<i64: 64, 1>}]} {
    %c0 = arith.constant 0 : index
    %c0_0 = arith.constant 0 : index
    %0 = vector.load %arg1[%c0, %c0_0] : memref<64x30xf32, #tpu.memory_space<vmem>>, vector<64x30xf32>
    %1 = vector.extract_strided_slice %0 {offsets = [0, 0], sizes = [64, 15], strides = [1, 1]} : vector<64x30xf32> to vector<64x15xf32>
    %2 = vector.extract_strided_slice %0 {offsets = [0, 15], sizes = [64, 15], strides = [1, 1]} : vector<64x30xf32> to vector<64x15xf32>
    %3 = arith.subf %1, %2 : vector<64x15xf32>
    %4 = math.absf %3 : vector<64x15xf32>
    %cst = arith.constant 0.000000e+00 : f32
    %5 = vector.broadcast %cst : f32 to vector<64x15xf32>
    %6 = arith.subf %5, %4 : vector<64x15xf32>
    %7 = math.exp %6 : vector<64x15xf32>
    %cst_1 = arith.constant 0.000000e+00 : f32
    %8 = vector.broadcast %cst_1 : f32 to vector<64x15xf32>
    %9 = arith.minimumf %3, %8 : vector<64x15xf32>
    %10 = math.log1p %7 : vector<64x15xf32>
    %11 = arith.subf %9, %10 : vector<64x15xf32>
    %12 = arith.subf %11, %3 : vector<64x15xf32>
    %13 = tpu.concatenate %11, %12 in 1 : vector<64x15xf32>, vector<64x15xf32> -> vector<64x30xf32>
    %c0_2 = arith.constant 0 : index
    %c0_3 = arith.constant 0 : index
    %14 = vector.load %arg3[%c0_2, %c0_3] : memref<64x30xf32, #tpu.memory_space<vmem>>, vector<64x30xf32>
    tpu.vector_store %arg3[%c0_2, %c0_3], %13 {strides = array<i32>} : memref<64x30xf32, #tpu.memory_space<vmem>>, vector<64x30xf32>,
    %cst_4 = arith.constant 1.000000e+00 : f32
    %15 = vector.broadcast %cst_4 : f32 to vector<64x15xf32>
    %16 = arith.addf %15, %7 : vector<64x15xf32>
    %17 = tpu.reciprocal %16 : vector<64x15xf32> -> vector<64x15xf32>
    %cst_5 = arith.constant 0.000000e+00 : f32
    %18 = vector.broadcast %cst_5 : f32 to vector<64x15xf32>
    %19 = arith.cmpf oge, %3, %18 : vector<64x15xf32>
    %20 = arith.mulf %7, %17 : vector<64x15xf32>
    %21 = arith.select %19, %17, %20 : vector<64x15xi1>, vector<64x15xf32>
    %c0_6 = arith.constant 0 : index
    %c0_7 = arith.constant 0 : index
    %22 = vector.load %arg4[%c0_6, %c0_7] : memref<64x15xf32, #tpu.memory_space<vmem>>, vector<64x15xf32>
    tpu.vector_store %arg4[%c0_6, %c0_7], %21 {strides = array<i32>} : memref<64x15xf32, #tpu.memory_space<vmem>>, vector<64x15xf32>,
    %cst_8 = arith.constant 0.000000e+00 : f32
    %23 = vector.broadcast %cst_8 : f32 to vector<64x15xf32>
    %24 = arith.cmpf ogt, %3, %23 : vector<64x15xf32>
    %c0_9 = arith.constant 0 : index
    %c0_10 = arith.constant 0 : index
    %25 = vector.load %arg2[%c0_9, %c0_10] : memref<1x15xf32, #tpu.memory_space<vmem>>, vector<1x15xf32>
    %cst_11 = arith.constant 0.000000e+00 : f32
    %26 = vector.shape_cast %25 : vector<1x15xf32> to vector<1x15xf32>
    %27 = vector.broadcast %26 : vector<1x15xf32> to vector<64x15xf32>
    %28 = vector.broadcast %cst_11 : f32 to vector<64x15xf32>
    %29 = arith.select %24, %27, %28 : vector<64x15xi1>, vector<64x15xf32>
    %cst_12 = arith.constant dense<0.000000e+00> : vector<64xf32>
    %30 = vector.multi_reduction <add>, %29, %cst_12 [1] : vector<64x15xf32> to vector<64xf32>
    %31 = vector.shape_cast %30 : vector<64xf32> to vector<64x1xf32>
    %c0_13 = arith.constant 0 : index
    %c0_14 = arith.constant 0 : index
    %32 = vector.load %arg5[%c0_13, %c0_14] : memref<64x1xf32, #tpu.memory_space<vmem>>, vector<64x1xf32>
    tpu.vector_store %arg5[%c0_13, %c0_14], %31 {strides = array<i32>} : memref<64x1xf32, #tpu.memory_space<vmem>>, vector<64x1xf32>,
    return
  }
  func.func @transform_0(%arg0: i32) -> (i32, i32) {
    %c0_i32 = arith.constant 0 : i32
    %c0_i32_0 = arith.constant 0 : i32
    return %arg0, %c0_i32 : i32, i32
  }
  func.func @transform_1(%arg0: i32) -> (i32, i32) {
    %c0_i32 = arith.constant 0 : i32
    %c0_i32_0 = arith.constant 0 : i32
    %c0_i32_1 = arith.constant 0 : i32
    return %c0_i32, %c0_i32_0 : i32, i32
  }
  func.func @transform_2(%arg0: i32) -> (i32, i32) {
    %c0_i32 = arith.constant 0 : i32
    %c0_i32_0 = arith.constant 0 : i32
    return %arg0, %c0_i32 : i32, i32
  }
  func.func @transform_3(%arg0: i32) -> (i32, i32) {
    %c0_i32 = arith.constant 0 : i32
    %c0_i32_0 = arith.constant 0 : i32
    return %arg0, %c0_i32 : i32, i32
  }
  func.func @transform_4(%arg0: i32) -> (i32, i32) {
    %c0_i32 = arith.constant 0 : i32
    %c0_i32_0 = arith.constant 0 : i32
    return %arg0, %c0_i32 : i32, i32
  }
}

</mosaic_0001>

<bundles_post_ra>
// kernel: ordinal_regression_layer.1
= control target key start
LH: loop header
LB: loop body
LE: loop exit
PB: predicated region body
PF: predicated region fallthrough
CT: control target
= control target key end

     0   :  { %s508_s19 = smov 113   ;;  %vm222_vm0 = vcmask 121856   ;;  %s509_s14 = smov 15   ;;  %s1032_s0 = inlined_call_operand.vmem [shape: f32[64,30], index: 0, kind: input, shape index: {}]   ;;  %s1033_s1 = inlined_call_operand.vmem [shape: f32[1,15], index: 1, kind: input, shape index: {}]   ;;  %s1034_s3 = inlined_call_operand.vmem [shape: f32[64,15], index: 3, kind: output, shape index: {1}]   ;;  %s1035_s4 = inlined_call_operand.vmem [shape: f32[64,1], index: 4, kind: output, shape index: {2}]   ;;  %s1036_s2 = inlined_call_operand.vmem [shape: f32[64,30], index: 2, kind: output, shape index: {0}]  }
   0x1   :  { %v16_v0 = vld [vmem:[%s1032_s0 + $0x10] sm:$0xff]  ;;  %v14_v1 = vld [vmem:[%s1032_s0] sm:$0xff]  ;;  %v547_v3 = vld [vmem:[%s1032_s0 + $0x18] sm:$0xff] }
   0x2   :  { %34 = vrot.lane.b32.xlu1 %v16_v0, %s508_s19  ;;  %30 = vrot.lane.b32.xlu0 %v14_v1, %s508_s19  ;;  %v18_v2 = vld [vmem:[%s1032_s0 + $0x20] sm:$0xff]  ;;  %v552_v4 = vld [vmem:[%s1032_s0 + $0x8] sm:$0xff] }
   0x3   :  { %38 = vrot.lane.b32.xlu2 %v18_v2, %s508_s19  ;;  %v19_v5 = vld [vmem:[%s1032_s0 + $0x28] sm:$0xff]  ;;  %v562_v6 = vld [vmem:[%s1032_s0 + $0x38] sm:$0xff]  ;;  %v567_v7 = vld [vmem:[%s1032_s0 + $0x30] sm:$0xff] }
   0x4   :  { %v596_v28 = vld [vmem:[%s1033_s1] ss:$0 sm:$0xff] }
   0xa   :  { %36 = vrot.lane.b32.xlu1 %v547_v3, %s508_s19  ;;  %32 = vrot.lane.b32.xlu0 %v552_v4, %s508_s19 }
   0xb   :  { %40 = vrot.lane.b32.xlu2 %v19_v5, %s508_s19 }
  0x12   :  { %44 = vrot.lane.b32.xlu1 %v562_v6, %s508_s19  ;;  %42 = vrot.lane.b32.xlu0 %v567_v7, %s508_s19 }
  0x5d   :  { %v39_v8 = vpop.permute.xlu2 %38 }
  0x5e   :  { %v571_v9 = vsub.f32 %v18_v2, %v39_v8 }
  0x60   :  { %v66_v10 = vand.u32 2147483647, %v571_v9  ;;  %vm396_vm1 = vcmp.gt.f32.partialorder %v571_v9, 0.0  ;;  %vm364_vm4 = vcmp.ge.f32.partialorder %v571_v9, 0.0 }
  0x61   :  { %v408_v34 = vsel %vm396_vm1, %v596_v28, 0.0 }
  0x62   :  { %v74_v11 = vsub.f32 0.0, %v66_v10  ;;  %v424_v63 = vsel %vm222_vm0, %v408_v34, 0.0 }
  0x64   :  { %v86_v12 = vmul.f32 1.442695, %v74_v11 }
  0x65   :  { %v41_v13 = vpop.permute.xlu2 %40 }
  0x66   :  { %460 = vpow2.f32 %v86_v12  ;;  %v574_v14 = vsub.f32 %v19_v5, %v41_v13 }
  0x68   :  { %v67_v15 = vand.u32 2147483647, %v574_v14  ;;  %vm365_vm15 = vcmp.ge.f32.partialorder %v574_v14, 0.0 }
  0x6a   :  { %v75_v16 = vsub.f32 0.0, %v67_v15 }
  0x6c   :  { %v577_v17 = vpop.eup %460  ;;  %v88_v18 = vmul.f32 1.442695, %v75_v16 }
  0x6d   :  { %v580_v19 = vadd.f32 1.0, %v577_v17 }
  0x6e   :  { %462 = vpow2.f32 %v88_v18 }
  0x6f   :  { %464 = vrcp.f32 %v580_v19  ;;  %vm309_vm2 = vweird.f32 %v580_v19  ;;  %v313_v29 = vand.u32 2147483647, %v580_v19  ;;  %v315_v30 = vand.u32 2147483648, %v580_v19 }
  0x71   :  { %vm615_vm7 = vcmp.eq.f32.partialorder %v313_v29, 8.507059e+37  ;;  %v316_v41 = vor.u32 1.1754944e-38, %v315_v30 }
  0x74   :  { %v583_v20 = vpop.eup %462  ;;  %v35_v21 = vpop.permute.xlu1 %34 }
  0x75   :  { %v31_v22 = vpop.permute.xlu0 %30  ;;  %v465_v23 = vpop.eup %464  ;;  %v586_v24 = vadd.f32 1.0, %v583_v20  ;;  %v588_v25 = vsub.f32 %v16_v0, %v35_v21 }
  0x76   :  { %v590_v26 = vsub.f32 %v14_v1, %v31_v22  ;;  %v305_v27 = vmul.f32 %v465_v23, %v580_v19  ;;  %vm310_vm3 = vweird.f32 %v465_v23 }
  0x77   :  { %466 = vrcp.f32 %v586_v24  ;;  %v64_v32 = vand.u32 2147483647, %v588_v25  ;;  %vm611_vm6 = vmor %vm309_vm2, %vm310_vm3  ;;  %vm394_vm8 = vcmp.gt.f32.partialorder %v588_v25, 0.0  ;;  %vm323_vm9 = vweird.f32 %v586_v24 }
  0x78   :  { %v306_v31 = vsub.f32 1.0, %v305_v27  ;;  %v62_v33 = vand.u32 2147483647, %v590_v26  ;;  %vm392_vm5 = vcmp.gt.f32.partialorder %v590_v26, 0.0  ;;  %v406_v48 = vsel %vm394_vm8, %v596_v28, 0.0 }
  0x79   :  { %v72_v36 = vsub.f32 0.0, %v64_v32  ;;  %v404_v38 = vsel %vm392_vm5, %v596_v28, 0.0  ;;  %v418_v52 = vsel %vm222_vm0, %v406_v48, 0.0  ;;  %v327_v55 = vand.u32 2147483647, %v586_v24 }
  0x7a   :  { %v307_v35 = vmul.f32 %v465_v23, %v306_v31  ;;  %v70_v37 = vsub.f32 0.0, %v62_v33  ;;  %v412_v42 = vsel %vm222_vm0, %v404_v38, 0.0  ;;  %419 = vadd.xlane.f32.xlu0 %v418_v52  ;;  %v329_v57 = vand.u32 2147483648, %v586_v24 }
  0x7b   :  { %v82_v44 = vmul.f32 1.442695, %v72_v36  ;;  %413 = vadd.xlane.f32.xlu1 %v412_v42  ;;  %vm328_vm14 = vcmp.eq.f32.partialorder %v327_v55, 8.507059e+37  ;;  %v96_v32 = vmin.f32 %v588_v25, 0.0 }
  0x7c   :  { %v308_v43 = vadd.f32 %v465_v23, %v307_v35  ;;  %v78_v45 = vmul.f32 1.442695, %v70_v37  ;;  %v37_v46 = vpop.permute.xlu1 %36  ;;  %v330_v5 = vor.u32 1.1754944e-38, %v329_v57 }
  0x7d   :  { %v33_v47 = vpop.permute.xlu0 %32  ;;  %v467_v49 = vpop.eup %466  ;;  %v624_v50 = vsub.f32 %v547_v3, %v37_v46  ;;  %468 = vpow2.f32 %v82_v44  ;;  %v707_v46 = vmul.f32 -0.5, %v577_v17 }
  0x7e   :  { %v627_v51 = vsub.f32 %v552_v4, %v33_v47  ;;  %v312_v53 = vsel %vm611_vm6, %v465_v23, %v308_v43  ;;  %v319_v54 = vmul.f32 %v467_v49, %v586_v24  ;;  %470 = vpow2.f32 %v78_v45 }
  0x7f   :  { %v317_v56 = vsel %vm615_vm7, %v316_v41, %v312_v53  ;;  %v65_v58 = vand.u32 2147483647, %v624_v50  ;;  %vm324_vm10 = vweird.f32 %v467_v49  ;;  %vm395_vm12 = vcmp.gt.f32.partialorder %v624_v50, 0.0 }
  0x80   :  { %v372_v59 = vmul.f32 %v577_v17, %v317_v56  ;;  %v320_v60 = vsub.f32 1.0, %v319_v54  ;;  %v63_v61 = vand.u32 2147483647, %v627_v51  ;;  %vm393_vm11 = vcmp.gt.f32.partialorder %v627_v51, 0.0  ;;  %vm652_vm13 = vmor %vm323_vm9, %vm324_vm10 }
  0x81   :  { %v73_v62 = vsub.f32 0.0, %v65_v58  ;;  %v405_v3 = vsel %vm393_vm11, %v596_v28, 0.0  ;;  %v407_v23 = vsel %vm395_vm12, %v596_v28, 0.0  ;;  %vm362_vm6 = vcmp.ge.f32.partialorder %v588_v25, 0.0 }
  0x82   :  { %v380_v0 = vsel %vm364_vm4, %v317_v56, %v372_v59  ;;  %v321_v1 = vmul.f32 %v467_v49, %v320_v60  ;;  %v71_v2 = vsub.f32 0.0, %v63_v61  ;;  %v415_v10 = vsel %vm222_vm0, %v405_v3, 0.0 }
  0x83   :  { %388 = vst.msk [vmem:[%s1034_s3 + $0x20] sm:$0xff] %vm222_vm0, %v380_v0  ;;  %v84_v8 = vmul.f32 1.442695, %v73_v62  ;;  %v657_v11 = vpop.eup %468  ;;  %425 = vadd.xlane.f32.xlu1 %v424_v63  ;;  %416 = vadd.xlane.f32.xlu2 %v415_v10  ;;  %v421_v35 = vsel %vm222_vm0, %v407_v23, 0.0  ;;  %vm360_vm9 = vcmp.ge.f32.partialorder %v590_v26, 0.0 }
  0x84   :  { %v322_v12 = vadd.f32 %v467_v49, %v321_v1  ;;  %v80_v13 = vmul.f32 1.442695, %v71_v2  ;;  %v45_v15 = vpop.permute.xlu1 %44  ;;  %v659_v18 = vpop.eup %470  ;;  %v662_v21 = vadd.f32 1.0, %v657_v11  ;;  %v123_v43 = vmul.f32 -0.5, %v657_v11 }
  0x85   :  { %v43_v16 = vpop.permute.xlu0 %42  ;;  %472 = vpow2.f32 %v84_v8  ;;  %v665_v22 = vsub.f32 %v562_v6, %v45_v15  ;;  %v673_v29 = vadd.f32 1.0, %v659_v18  ;;  %v126_v61 = vand.u32 2147483647, %v657_v11 }
  0x86   :  { %v326_v27 = vsel %vm652_vm13, %v467_v49, %v322_v12  ;;  %474 = vpow2.f32 %v80_v13  ;;  %v676_v30 = vsub.f32 %v567_v7, %v43_v16  ;;  %v287_v33 = vand.u32 2147483648, %v662_v21 }
  0x87   :  { %v331_v31 = vsel %vm328_vm14, %v330_v5, %v326_v27  ;;  %476 = vrcp.f32 %v662_v21  ;;  %v69_v34 = vand.u32 2147483647, %v665_v22  ;;  %v94_v7 = vmin.f32 %v590_v26, 0.0 }
  0x88   :  { %v373_v6 = vmul.f32 %v583_v20, %v331_v31  ;;  %478 = vrcp.f32 %v673_v29  ;;  %v285_v37 = vand.u32 2147483647, %v662_v21  ;;  %v68_v38 = vand.u32 2147483647, %v676_v30 }
  0x89   :  { %480 = vlog2.f32 %v580_v19  ;;  %v257_v40 = vand.u32 2147483647, %v673_v29  ;;  %v259_v41 = vand.u32 2147483648, %v673_v29  ;;  %v77_v42 = vsub.f32 0.0, %v69_v34 }
  0x8a   :  { %v381_v36 = vsel %vm365_vm15, %v331_v31, %v373_v6  ;;  %482 = vlog2.f32 %v662_v21  ;;  %v95_v19 = vmin.f32 %v627_v51, 0.0  ;;  %vm281_vm1 = vweird.f32 %v662_v21 }
  0x8b   :  { %v690_v39 = vpop.eup %472  ;;  %389 = vst.msk [vmem:[%s1034_s3 + $0x28] sm:$0xff] %vm222_vm0, %v381_v36  ;;  %422 = vadd.xlane.f32.xlu2 %v421_v35  ;;  %v288_v48 = vor.u32 1.1754944e-38, %v287_v33  ;;  %vm253_vm2 = vweird.f32 %v673_v29  ;;  %vm715_vm3 = vcmp.eq.f32.partialorder %v285_v37, 8.507059e+37  ;;  %v92_v55 = vmul.f32 1.442695, %v77_v42 }
  0x8c   :  { %v699_v44 = vpop.eup %474  ;;  %v702_v45 = vadd.f32 1.0, %v690_v39  ;;  %v76_v56 = vsub.f32 0.0, %v68_v38  ;;  %vm721_vm4 = vcmp.eq.f32.partialorder %v257_v40, 8.507059e+37  ;;  %v260_v59 = vor.u32 1.1754944e-38, %v259_v41 }
  0x8d   :  { %v477_v47 = vpop.eup %476  ;;  %v712_v49 = vadd.f32 1.0, %v699_v44  ;;  %v124_v60 = vadd.f32 1.0, %v123_v43  ;;  %v114_v1 = vmul.f32 -0.5, %v699_v44  ;;  %vm127_vm10 = vcmp.lt.f32.partialorder %v126_v61, 0.0004427343 }
  0x8e   :  { %v479_v52 = vpop.eup %478  ;;  %v277_v53 = vmul.f32 %v477_v47, %v662_v21  ;;  %484 = vrcp.f32 %v702_v45  ;;  %v301_v0 = vand.u32 2147483648, %v702_v45  ;;  %vm282_vm5 = vweird.f32 %v477_v47 }
  0x8f   :  { %v249_v57 = vmul.f32 %v479_v52, %v673_v29  ;;  %v726_v62 = vpop.eup %480  ;;  %486 = vrcp.f32 %v712_v49  ;;  %vm295_vm7 = vweird.f32 %v702_v45  ;;  %v299_v3 = vand.u32 2147483647, %v702_v45  ;;  %vm283_vm11 = vmor %vm281_vm1, %vm282_vm5 }
  0x90   :  { %v278_v63 = vsub.f32 1.0, %v277_v53  ;;  %v483_v4 = vpop.eup %482  ;;  %vm254_vm8 = vweird.f32 %v479_v52  ;;  %488 = vpow2.f32 %v92_v55  ;;  %v90_v8 = vmul.f32 1.442695, %v76_v56 }
  0x91   :  { %v250_v2 = vsub.f32 1.0, %v249_v57  ;;  %v271_v12 = vand.u32 2147483647, %v712_v49  ;;  %v122_v13 = vmul.f32 0.6931472, %v483_v4  ;;  %v125_v15 = vmul.f32 %v657_v11, %v124_v60  ;;  %vm255_vm14 = vmor %vm253_vm2, %vm254_vm8 }
  0x92   :  { %v279_v5 = vmul.f32 %v477_v47, %v278_v63  ;;  %v302_v27 = vor.u32 1.1754944e-38, %v301_v0  ;;  %490 = vpow2.f32 %v90_v8  ;;  %vm741_vm12 = vcmp.eq.f32.partialorder %v299_v3, 8.507059e+37 }
  0x93   :  { %v251_v10 = vmul.f32 %v479_v52, %v250_v2  ;;  %vm267_vm13 = vweird.f32 %v712_v49  ;;  %v273_v34 = vand.u32 2147483648, %v712_v49  ;;  %v128_v35 = vsel %vm127_vm10, %v125_v15, %v122_v13 }
  0x94   :  { %v485_v16 = vpop.eup %484  ;;  %v280_v23 = vadd.f32 %v477_v47, %v279_v5  ;;  %v752_v21 = vsub.f32 %v96_v32, %v128_v35  ;;  %492 = vlog2.f32 %v712_v49  ;;  %v115_v38 = vadd.f32 1.0, %v114_v1 }
  0x95   :  { %v252_v31 = vadd.f32 %v479_v52, %v251_v10  ;;  %v291_v6 = vmul.f32 %v485_v16, %v702_v45  ;;  %v487_v36 = vpop.eup %486  ;;  %vm758_vm15 = vcmp.eq.f32.partialorder %v271_v12, 8.507059e+37  ;;  %vm296_vm1 = vweird.f32 %v485_v16 }
  0x96   :  { %v284_v37 = vsel %vm283_vm11, %v477_v47, %v280_v23  ;;  %v263_v43 = vmul.f32 %v487_v36, %v712_v49  ;;  %v762_v53 = vpop.eup %488  ;;  %vm363_vm2 = vcmp.ge.f32.partialorder %v624_v50, 0.0  ;;  %vm268_vm5 = vweird.f32 %v487_v36 }
  0x97   :  { %v289_v40 = vsel %vm715_vm3, %v288_v48, %v284_v37  ;;  %v256_v41 = vsel %vm255_vm14, %v479_v52, %v252_v31  ;;  %v292_v42 = vsub.f32 1.0, %v291_v6  ;;  %v770_v56 = vadd.f32 1.0, %v762_v53 }
  0x98   :  { %v370_v55 = vmul.f32 %v657_v11, %v289_v40  ;;  %v261_v32 = vsel %vm721_vm4, %v260_v59, %v256_v41  ;;  %v264_v54 = vsub.f32 1.0, %v263_v43  ;;  %v772_v57 = vpop.eup %490  ;;  %vm361_vm3 = vcmp.ge.f32.partialorder %v627_v51, 0.0  ;;  %vm297_vm4 = vmor %vm295_vm7, %vm296_vm1 }
  0x99   :  { %v368_v48 = vmul.f32 %v659_v18, %v261_v32  ;;  %v293_v52 = vmul.f32 %v485_v16, %v292_v42  ;;  %v184_v11 = vsub.f32 %v752_v21, %v588_v25  ;;  %v117_v58 = vand.u32 2147483647, %v699_v44 }
  0x9a   :  { %v378_v60 = vsel %vm362_vm6, %v289_v40, %v370_v55  ;;  %494 = vlog2.f32 %v673_v29  ;;  %v265_v63 = vmul.f32 %v487_v36, %v264_v54  ;;  %v493_v0 = vpop.eup %492  ;;  %v274_v25 = vor.u32 1.1754944e-38, %v273_v34  ;;  %vm269_vm6 = vmor %vm267_vm13, %vm268_vm5 }
  0x9b   :  { %386 = vst.msk [vmem:[%s1034_s3 + $0x10] sm:$0xff] %vm222_vm0, %v378_v60  ;;  %v376_v59 = vsel %vm360_vm9, %v261_v32, %v368_v48  ;;  %v294_v61 = vadd.f32 %v485_v16, %v293_v52  ;;  %496 = vrcp.f32 %v770_v56  ;;  %v355_v29 = vand.u32 2147483647, %v770_v56 }
  0x9c   :  { %384 = vst.msk [vmem:[%s1034_s3] sm:$0xff] %vm222_vm0, %v376_v59  ;;  %v797_v1 = vadd.f32 1.0, %v772_v57  ;;  %v105_v2 = vmul.f32 -0.5, %v659_v18  ;;  %v266_v4 = vadd.f32 %v487_v36, %v265_v63  ;;  %v357_v5 = vand.u32 2147483648, %v770_v56  ;;  %202 = vrot.lane.b32.xlu1 %v184_v11, %s509_s14 }
  0x9d   :  { %v298_v3 = vsel %vm297_vm4, %v485_v16, %v294_v61  ;;  %v113_v8 = vmul.f32 0.6931472, %v493_v0  ;;  %vm351_vm7 = vweird.f32 %v770_v56  ;;  %v116_v12 = vmul.f32 %v699_v44, %v115_v38 }
  0x9e   :  { %v303_v10 = vsel %vm741_vm12, %v302_v27, %v298_v3  ;;  %498 = vrcp.f32 %v797_v1  ;;  %v270_v15 = vsel %vm269_vm6, %v487_v36, %v266_v4  ;;  %v341_v16 = vand.u32 2147483647, %v797_v1 }
  0x9f   :  { %v371_v13 = vmul.f32 %v690_v39, %v303_v10  ;;  %vm118_vm8 = vcmp.lt.f32.partialorder %v117_v58, 0.0004427343  ;;  %v275_v27 = vsel %vm758_vm15, %v274_v25, %v270_v15  ;;  %vm814_vm9 = vcmp.eq.f32.partialorder %v355_v29, 8.507059e+37 }
  0xa0   :  { %v495_v23 = vpop.eup %494  ;;  %v343_v49 = vand.u32 2147483648, %v797_v1  ;;  %v119_v6 = vsel %vm118_vm8, %v116_v12, %v113_v8  ;;  %v106_v33 = vadd.f32 1.0, %v105_v2  ;;  %v369_v36 = vmul.f32 %v699_v44, %v275_v27 }
  0xa1   :  { %v497_v34 = vpop.eup %496  ;;  %v379_v35 = vsel %vm363_vm2, %v303_v10, %v371_v13  ;;  %v358_v37 = vor.u32 1.1754944e-38, %v357_v5  ;;  %v824_v38 = vsub.f32 %v95_v19, %v119_v6  ;;  %vm337_vm11 = vweird.f32 %v797_v1 }
  0xa2   :  { %387 = vst.msk [vmem:[%s1034_s3 + $0x18] sm:$0xff] %vm222_vm0, %v379_v35  ;;  %v347_v40 = vmul.f32 %v497_v34, %v770_v56  ;;  %vm352_vm10 = vweird.f32 %v497_v34  ;;  %v104_v41 = vmul.f32 0.6931472, %v495_v23  ;;  %v377_v42 = vsel %vm361_vm3, %v275_v27, %v369_v36 }
  0xa3   :  { %vm834_vm12 = vcmp.eq.f32.partialorder %v341_v16, 8.507059e+37  ;;  %v344_v19 = vor.u32 1.1754944e-38, %v343_v49  ;;  %v183_v43 = vsub.f32 %v824_v38, %v627_v51  ;;  %v108_v47 = vand.u32 2147483647, %v659_v18  ;;  %385 = vst.msk [vmem:[%s1034_s3 + $0x8] sm:$0xff] %vm222_vm0, %v377_v42  ;;  %vm856_vm1 = vmor %vm351_vm7, %vm352_vm10 }
  0xa4   :  { %v499_v55 = vpop.eup %498  ;;  %v348_v32 = vsub.f32 1.0, %v347_v40  ;;  %v107_v48 = vmul.f32 %v659_v18, %v106_v33  ;;  %500 = vlog2.f32 %v586_v24  ;;  %v150_v52 = vmul.f32 -0.5, %v583_v20 }
  0xa5   :  { %vm367_vm13 = vcmp.ge.f32.partialorder %v665_v22, 0.0  ;;  %v333_v54 = vmul.f32 %v499_v55, %v797_v1  ;;  %200 = vrot.lane.b32.xlu0 %v183_v43, %s509_s14  ;;  %vm109_vm14 = vcmp.lt.f32.partialorder %v108_v47, 0.0004427343  ;;  %v99_v51 = vmin.f32 %v574_v14, 0.0 }
  0xa6   :  { %v153_v60 = vand.u32 2147483647, %v583_v20  ;;  %v349_v11 = vmul.f32 %v497_v34, %v348_v32  ;;  %vm338_vm15 = vweird.f32 %v499_v55  ;;  %v110_v58 = vsel %vm109_vm14, %v107_v48, %v104_v41 }
  0xa7   :  { %v151_v59 = vadd.f32 1.0, %v150_v52  ;;  %v334_v18 = vsub.f32 1.0, %v333_v54  ;;  %v862_v61 = vsub.f32 %v94_v7, %v110_v58  ;;  %v98_v0 = vmin.f32 %v571_v9, 0.0  ;;  %vm881_vm5 = vmor %vm337_vm11, %vm338_vm15 }
  0xa8   :  { %vm864_vm2 = vcmp.lt.f32.partialorder %v153_v60, 0.0004427343  ;;  %v350_v25 = vadd.f32 %v497_v34, %v349_v11  ;;  %v140_v29 = vmul.f32 0.6931472, %v726_v62  ;;  %v142_v2 = vadd.f32 1.0, %v707_v46 }
  0xa9   :  { %v144_v3 = vand.u32 2147483647, %v577_v17  ;;  %v335_v4 = vmul.f32 %v499_v55, %v334_v18  ;;  %v182_v5 = vsub.f32 %v862_v61, %v590_v26  ;;  %v152_v7 = vmul.f32 %v583_v20, %v151_v59 }
  0xaa   :  { %502 = vlog2.f32 %v702_v45  ;;  %v501_v8 = vpop.eup %500  ;;  %v354_v10 = vsel %vm856_vm1, %v497_v34, %v350_v25  ;;  %v143_v46 = vmul.f32 %v577_v17, %v142_v2  ;;  %v132_v26 = vmul.f32 -0.5, %v690_v39 }
  0xab   :  { %vm145_vm3 = vcmp.lt.f32.partialorder %v144_v3, 0.0004427343  ;;  %v359_v20 = vsel %vm814_vm9, %v358_v37, %v354_v10  ;;  %v336_v45 = vadd.f32 %v499_v55, %v335_v4  ;;  %198 = vrot.lane.b32.xlu2 %v182_v5, %s509_s14  ;;  %v149_v12 = vmul.f32 0.6931472, %v501_v8 }
  0xac   :  { %v135_v13 = vand.u32 2147483647, %v690_v39  ;;  %v375_v15 = vmul.f32 %v762_v53, %v359_v20  ;;  %vm366_vm4 = vcmp.ge.f32.partialorder %v676_v30, 0.0  ;;  %v146_v16 = vsel %vm145_vm3, %v143_v46, %v140_v29 }
  0xad   :  { %v133_v23 = vadd.f32 1.0, %v132_v26  ;;  %v340_v17 = vsel %vm881_vm5, %v499_v55, %v336_v45  ;;  %v155_v27 = vsel %vm864_vm2, %v152_v7, %v149_v12  ;;  %v897_v31 = vsub.f32 %v98_v0, %v146_v16 }
  0xae   :  { %vm899_vm6 = vcmp.lt.f32.partialorder %v135_v13, 0.0004427343  ;;  %v383_v6 = vsel %vm367_vm13, %v359_v20, %v375_v15  ;;  %v345_v33 = vsel %vm834_vm12, %v344_v19, %v340_v17  ;;  %v907_v34 = vsub.f32 %v99_v51, %v155_v27 }
  0xaf   :  { %v134_v35 = vmul.f32 %v690_v39, %v133_v23  ;;  %391 = vst.msk [vmem:[%s1034_s3 + $0x38] sm:$0xff] %vm222_vm0, %v383_v6  ;;  %v374_v37 = vmul.f32 %v772_v57, %v345_v33  ;;  %v186_v40 = vsub.f32 %v897_v31, %v571_v9  ;;  %504 = vlog2.f32 %v770_v56 }
  0xb0   :  { %v503_v36 = vpop.eup %502  ;;  %v168_v41 = vmul.f32 -0.5, %v762_v53  ;;  %v187_v42 = vsub.f32 %v907_v34, %v574_v14  ;;  %v97_v39 = vmin.f32 %v624_v50, 0.0  ;;  %v171_v19 = vand.u32 2147483647, %v762_v53 }
  0xb1   :  { %v131_v44 = vmul.f32 0.6931472, %v503_v36  ;;  %v382_v43 = vsel %vm366_vm4, %v345_v33, %v374_v37  ;;  %206 = vrot.lane.b32.xlu0 %v186_v40, %s509_s14  ;;  %506 = vlog2.f32 %v797_v1  ;;  %v159_v9 = vmul.f32 -0.5, %v772_v57 }
  0xb2   :  { %v169_v47 = vadd.f32 1.0, %v168_v41  ;;  %390 = vst.msk [vmem:[%s1034_s3 + $0x30] sm:$0xff] %vm222_vm0, %v382_v43  ;;  %208 = vrot.lane.b32.xlu1 %v187_v42, %s509_s14  ;;  %v162_v48 = vand.u32 2147483647, %v772_v57  ;;  %vm172_vm7 = vcmp.lt.f32.partialorder %v171_v19, 0.0004427343 }
  0xb3   :  { %v137_v56 = vsel %vm899_vm6, %v134_v35, %v131_v44  ;;  %v160_v32 = vadd.f32 1.0, %v159_v9  ;;  %v101_v58 = vmin.f32 %v665_v22, 0.0  ;;  %v100_v63 = vmin.f32 %v676_v30, 0.0 }
  0xb4   :  { %v177_v55 = vsub.f32 %v97_v39, %v137_v56  ;;  %v170_v52 = vmul.f32 %v762_v53, %v169_v47  ;;  %vm163_vm8 = vcmp.lt.f32.partialorder %v162_v48, 0.0004427343  ;;  %vm399_vm9 = vcmp.gt.f32.partialorder %v665_v22, 0.0 }
  0xb5   :  { %v505_v54 = vpop.eup %504  ;;  %v161_v60 = vmul.f32 %v772_v57, %v160_v32  ;;  %v411_v57 = vsel %vm399_vm9, %v596_v28, 0.0  ;;  %vm398_vm10 = vcmp.gt.f32.partialorder %v676_v30, 0.0  ;;  %vm397_vm11 = vcmp.gt.f32.partialorder %v574_v14, 0.0 }
  0xb6   :  { %v185_v1 = vsub.f32 %v177_v55, %v624_v50  ;;  %v167_v51 = vmul.f32 0.6931472, %v505_v54  ;;  %v433_v29 = vsel %vm222_vm0, %v411_v57, 0.0  ;;  %v410_v2 = vsel %vm398_vm10, %v596_v28, 0.0 }
  0xb7   :  { %v507_v11 = vpop.eup %506  ;;  %v409_v3 = vsel %vm397_vm11, %v596_v28, 0.0  ;;  %v430_v4 = vsel %vm222_vm0, %v410_v2, 0.0  ;;  %vm436_vm12 = vcmask 7168   ;;  %vm231_vm13 = vcmask 244736  }
  0xb8   :  { %204 = vrot.lane.b32.xlu2 %v185_v1, %s509_s14  ;;  %v173_v59 = vsel %vm172_vm7, %v170_v52, %v167_v51  ;;  %v158_v24 = vmul.f32 0.6931472, %v507_v11  ;;  %v427_v5 = vsel %vm222_vm0, %v409_v3, 0.0 }
  0xb9   :  { %v181_v18 = vsub.f32 %v101_v58, %v173_v59 }
  0xba   :  { %v164_v0 = vsel %vm163_vm8, %v161_v60, %v158_v24 }
  0xbb   :  { %v189_v53 = vsub.f32 %v181_v18, %v665_v22  ;;  %v180_v25 = vsub.f32 %v100_v63, %v164_v0 }
  0xbd   :  { %212 = vrot.lane.b32.xlu0 %v189_v53, %s509_s14  ;;  %v188_v50 = vsub.f32 %v180_v25, %v676_v30 }
  0xc0   :  { %210 = vrot.lane.b32.xlu2 %v188_v50, %s509_s14 }
  0xdc   :  { %434 = vadd.xlane.f32.xlu1 %v433_v29 }
  0xe7   :  { %431 = vadd.xlane.f32.xlu0 %v430_v4 }
  0xe9   :  { %428 = vadd.xlane.f32.xlu2 %v427_v5 }
  0xed   :  { %v420_v30 = vpop.xlane.xlu0 %419 }
  0xee   :  { %v414_v22 = vpop.xlane.xlu1 %413  ;;  %439 = vst.msk [vmem:[%s1035_s4 + $0x10] sm:$0xff] %vm436_vm12, %v420_v30 }
  0xef   :  { %437 = vst.msk [vmem:[%s1035_s4] sm:$0xff] %vm436_vm12, %v414_v22 }
  0xf6   :  { %v417_v14 = vpop.xlane.xlu2 %416  ;;  %v426_v28 = vpop.xlane.xlu1 %425 }
  0xf7   :  { %438 = vst.msk [vmem:[%s1035_s4 + $0x8] sm:$0xff] %vm436_vm12, %v417_v14 }
  0xf8   :  { %441 = vst.msk [vmem:[%s1035_s4 + $0x20] sm:$0xff] %vm436_vm12, %v426_v28 }
  0xfe   :  { %v423_v7 = vpop.xlane.xlu2 %422 }
  0xff   :  { %440 = vst.msk [vmem:[%s1035_s4 + $0x18] sm:$0xff] %vm436_vm12, %v423_v7 }
 0x106   :  { %v199_v8 = vpop.permute.xlu2 %198 }
 0x107   :  { %v223_v10 = vsel %vm222_vm0, %v862_v61, %v199_v8 }
 0x108   :  { %232 = vst.msk [vmem:[%s1036_s2] sm:$0xff] %vm231_vm13, %v223_v10 }
 0x10e   :  { %v203_v62 = vpop.permute.xlu1 %202 }
 0x10f   :  { %v225_v46 = vsel %vm222_vm0, %v752_v21, %v203_v62 }
 0x110   :  { %234 = vst.msk [vmem:[%s1036_s2 + $0x10] sm:$0xff] %vm231_vm13, %v225_v46 }
 0x112   :  { %v205_v26 = vpop.permute.xlu2 %204 }
 0x113   :  { %v226_v20 = vsel %vm222_vm0, %v177_v55, %v205_v26 }
 0x114   :  { %235 = vst.msk [vmem:[%s1036_s2 + $0x18] sm:$0xff] %vm231_vm13, %v226_v20 }
 0x117   :  { %v201_v61 = vpop.permute.xlu0 %200 }
 0x118   :  { %v224_v45 = vsel %vm222_vm0, %v824_v38, %v201_v61 }
 0x119   :  { %233 = vst.msk [vmem:[%s1036_s2 + $0x8] sm:$0xff] %vm231_vm13, %v224_v45 }
 0x11a   :  { %v211_v21 = vpop.permute.xlu2 %210 }
 0x11b   :  { %v229_v12 = vsel %vm222_vm0, %v180_v25, %v211_v21 }
 0x11c   :  { %238 = vst.msk [vmem:[%s1036_s2 + $0x30] sm:$0xff] %vm231_vm13, %v229_v12 }
 0x123   :  { %v207_v13 = vpop.permute.xlu0 %206 }
 0x124   :  { %v209_v15 = vpop.permute.xlu1 %208  ;;  %v227_v16 = vsel %vm222_vm0, %v897_v31, %v207_v13 }
 0x125   :  { %v228_v38 = vsel %vm222_vm0, %v907_v34, %v209_v15  ;;  %236 = vst.msk [vmem:[%s1036_s2 + $0x20] sm:$0xff] %vm231_vm13, %v227_v16 }
 0x126   :  { %237 = vst.msk [vmem:[%s1036_s2 + $0x28] sm:$0xff] %vm231_vm13, %v228_v38 }
 0x12f   :  { %v213_v23 = vpop.permute.xlu0 %212 }
 0x130   :  { %v230_v17 = vsel %vm222_vm0, %v181_v18, %v213_v23 }
 0x131   :  { %239 = vst.msk [vmem:[%s1036_s2 + $0x38] sm:$0xff] %vm231_vm13, %v230_v17 }
 0x14f   :  { %v435_v27 = vpop.xlane.xlu1 %434 }
 0x150   :  { %444 = vst.msk [vmem:[%s1035_s4 + $0x38] sm:$0xff] %vm436_vm12, %v435_v27 }
 0x15a   :  { %v432_v31 = vpop.xlane.xlu0 %431 }
 0x15b   :  { %443 = vst.msk [vmem:[%s1035_s4 + $0x30] sm:$0xff] %vm436_vm12, %v432_v31 }
 0x15c   :  { %v429_v49 = vpop.xlane.xlu2 %428 }
 0x15d   :  { %442 = vst.msk [vmem:[%s1035_s4 + $0x28] sm:$0xff] %vm436_vm12, %v429_v49 }

</bundles_post_ra>
